<compile_context>
chip_gen: v5e
topology: v5e:2x2
jax: 0.10.0
libtpu: 0.0.40
codegen_flags: <defaults>
</compile_context>

<pallas_src>
import jax
import jax.numpy as jnp
from jax import lax
from jax.experimental import pallas as pl
from jax.experimental.pallas import tpu as pltpu


def _frozen_bn_kernel(s_ref, b_ref, x_ref, o_ref):
    # s_ref / b_ref are either (tr, 1) (broadcast along lanes) or (1, tl)
    # (broadcast along sublanes). Pure VPU elementwise work, no promotion.
    o_ref[...] = (x_ref[...] * s_ref[...] + b_ref[...]).astype(o_ref.dtype)


def _vmem_budget():
    """Generation-aware (total_resident_budget, vmem_limit) in bytes."""
    cap = 64 << 20                       # conservative fallback (v7x per-TC VMEM)
    try:
        info = pltpu.get_tpu_info()
        cap = int(getattr(info, "vmem_capacity_bytes", cap))
    except Exception:
        pass
    # Total double-buffered residency (x tile + out tile + padded params):
    #   v5e/v6e (128 MiB physical) -> 48 MiB;  v7x (64 MiB/TC) -> 24 MiB.
    total_budget = min(48 << 20, (cap * 3) // 8)
    vmem_limit = min(cap, total_budget + (16 << 20))   # headroom for scratch
    return total_budget, vmem_limit


def _resident_bytes(tr, tl, x_item, p_item, params_per_row):
    """Double-buffered VMEM residency of one grid step's blocks."""
    xio = 2 * tr * tl * x_item                     # x tile + out tile
    if params_per_row:
        p = 2 * tr * 128 * p_item                  # two (tr,1) blocks, lane-padded to 128
    else:
        p = 2 * 8 * tl * p_item                    # two (1,tl) blocks, sublane-padded to 8
    return 2 * (xio + p)                           # x2 pipeline buffers


def _pick_tiles(rows, lanes, x_item, p_item, params_per_row, total_budget):
    """Choose (row_tile, lane_tile) for a (rows, lanes) slab under a VMEM budget
    that includes the padded param blocks and double buffering."""
    # --- lane (last-dim) tile: full extent if it fits, else a 128-multiple ---
    tl = lanes
    if _resident_bytes(8, tl, x_item, p_item, params_per_row) > total_budget:
        fixed = _resident_bytes(8, 0, x_item, p_item, params_per_row)
        per_chunk = (_resident_bytes(8, 128, x_item, p_item, params_per_row) - fixed)
        n = max(1, (total_budget - fixed) // max(1, per_chunk))
        tl = int(min((lanes // 128) * 128, n * 128))
        tl = max(128, tl)

    # --- sublane (row) tile: as many rows as fit, 8-aligned ---
    if params_per_row:
        per_row = 2 * (2 * tl * x_item + 2 * 128 * p_item)
        max_rows = max(8, total_budget // per_row)
        max_rows = min(max_rows, 2048)             # cap tr (review: padded params)
    else:
        fixed = 2 * (2 * 8 * tl * p_item)
        per_row = 2 * (2 * tl * x_item)
        max_rows = max(8, (total_budget - fixed) // per_row)

    if rows <= max_rows:
        tr = rows                                  # equals full dim -> always legal
    else:
        tr = max(8, (int(max_rows) // 8) * 8)

    # --- multi-TC split (v7x): avoid a single-block grid for non-tiny tensors ---
    total_bytes = rows * lanes * x_item
    if total_bytes >= (512 << 10) and pl.cdiv(rows, tr) * pl.cdiv(lanes, tl) < 2:
        if rows > 8:
            tr = ((rows + 15) // 16) * 8           # ~2 row blocks, 8-aligned
        elif lanes >= 256:
            tl = max(128, ((lanes // 2) // 128) * 128)
    return int(tr), int(tl)


def frozen_batch_norm_2d(x, weight, bias, running_mean, running_var, *,
                         eps=1e-5, donate=True):
    """x: (N, C, H, W); weight/bias/running_mean/running_var: (C,).

    Set donate=False if the caller still needs x after this call (otherwise the
    kernel aliases its output over x's buffer when XLA can donate it)."""
    N, C, H, W = x.shape
    hw = H * W

    # Fold the frozen statistics into one per-channel affine (C-element math).
    scale = weight.astype(jnp.float32) * lax.rsqrt(
        running_var.astype(jnp.float32) + jnp.float32(eps))
    shift = bias.astype(jnp.float32) - running_mean.astype(jnp.float32) * scale

    # Low-precision activations keep low-precision params (bf16 VPU on v6e/v7x,
    # half the padded-param VMEM); f32 activations stay f32 (matches PyTorch).
    if jnp.issubdtype(x.dtype, jnp.floating) and jnp.dtype(x.dtype).itemsize < 4:
        p_dtype = x.dtype
    else:
        p_dtype = jnp.float32

    # Layout choice (both are free reshapes of contiguous NCHW):
    #   A) rows = N*C, lanes = H*W      (params per row, broadcast along lanes)
    #   B) rows = N,   lanes = C*H*W    (params per lane, broadcast along rows)
    use_lane_params = (hw < 128) and ((C * hw) % 128 == 0)
    if use_lane_params:
        rows, lanes = N, C * hw
        x2d = x.reshape(rows, lanes)
        scale_v = jnp.repeat(scale, hw).astype(p_dtype).reshape(1, lanes)
        shift_v = jnp.repeat(shift, hw).astype(p_dtype).reshape(1, lanes)
        params_per_row = False
    else:
        rows, lanes = N * C, hw
        x2d = x.reshape(rows, lanes)
        scale_v = jnp.tile(scale, N).astype(p_dtype).reshape(rows, 1)
        shift_v = jnp.tile(shift, N).astype(p_dtype).reshape(rows, 1)
        params_per_row = True

    x_item = jnp.dtype(x.dtype).itemsize
    p_item = jnp.dtype(p_dtype).itemsize
    total_budget, vmem_limit = _vmem_budget()
    tr, tl = _pick_tiles(rows, lanes, x_item, p_item, params_per_row, total_budget)

    nr, nl = pl.cdiv(rows, tr), pl.cdiv(lanes, tl)
    if params_per_row:
        # Lane axis innermost: (tr,1) param blocks keep the same block index
        # across inner steps, so Pallas does not re-DMA them.
        grid = (nr, nl)
        x_spec = pl.BlockSpec((tr, tl), lambda i, j: (i, j))
        p_spec = pl.BlockSpec((tr, 1), lambda i, j: (i, 0))
    else:
        # Row axis innermost: (1,tl) param blocks are reused across row steps.
        grid = (nl, nr)
        x_spec = pl.BlockSpec((tr, tl), lambda j, i: (i, j))
        p_spec = pl.BlockSpec((1, tl), lambda j, i: (0, j))

    extra = {}
    if donate:
        extra["input_output_aliases"] = {2: 0}     # write output in place over x2d

    out2d = pl.pallas_call(
        _frozen_bn_kernel,
        out_shape=jax.ShapeDtypeStruct((rows, lanes), x.dtype),
        grid_spec=pltpu.PrefetchScalarGridSpec(
            num_scalar_prefetch=0,
            grid=grid,
            in_specs=[p_spec, p_spec, x_spec],     # scale, shift, x
            out_specs=x_spec,
        ),
        compiler_params=pltpu.CompilerParams(
            dimension_semantics=("parallel", "parallel"),
            vmem_limit_bytes=int(vmem_limit),
        ),
        **extra,
    )(scale_v, shift_v, x2d)

    return out2d.reshape(N, C, H, W)


if __name__ == "__main__":
    key = jax.random.PRNGKey(0)
    N, C, H, W = 2, 4, 16, 16

    kx, kw, kb, km, kv = jax.random.split(key, 5)
    x = jax.random.normal(kx, (N, C, H, W), dtype=jnp.float32)
    # Deterministic "frozen" parameters (as if loaded from a trained model).
    weight = 1.0 + 0.1 * jax.random.normal(kw, (C,), dtype=jnp.float32)
    bias = 0.1 * jax.random.normal(kb, (C,), dtype=jnp.float32)
    running_mean = 0.5 * jax.random.normal(km, (C,), dtype=jnp.float32)
    running_var = jnp.abs(1.0 + 0.2 * jax.random.normal(kv, (C,), dtype=jnp.float32))

    # donate=False: the demo re-reads x below for the reference check.
    out = frozen_batch_norm_2d(x, weight, bias, running_mean, running_var,
                               donate=False)
    out = jax.block_until_ready(out)

    # Pure-JAX reference (mirrors the PyTorch forward exactly).
    w_ = weight.reshape(1, C, 1, 1)
    b_ = bias.reshape(1, C, 1, 1)
    rv_ = running_var.reshape(1, C, 1, 1)
    rm_ = running_mean.reshape(1, C, 1, 1)
    scale_ref = w_ * lax.rsqrt(rv_ + 1e-5)
    bias_ref = b_ - rm_ * scale_ref
    ref = x * scale_ref + bias_ref

    assert out.shape == (N, C, H, W)
    assert out.dtype == x.dtype
    assert jnp.allclose(out, ref, atol=1e-5, rtol=1e-5)

    print("KERNEL_OK")
</pallas_src>

<mosaic_0001>
module attributes {stable_mosaic.version = 11 : i64} {
  func.func @_frozen_bn_kernel(%arg0: i32, %arg1: i32, %arg2: memref<8x1xf32, #tpu.memory_space<vmem>>, %arg3: memref<8x1xf32, #tpu.memory_space<vmem>>, %arg4: memref<8x256xf32, #tpu.memory_space<vmem>>, %arg5: memref<8x256xf32, #tpu.memory_space<vmem>>) attributes {dimension_semantics = [#tpu.dimension_semantics<parallel>, #tpu.dimension_semantics<parallel>], iteration_bounds = array<i64: 1, 1>, scalar_prefetch = 0 : i64, scratch_operands = 0 : i64, tpu.core_type = #tpu.core_type<tc>, window_params = [{transform_indices = @transform_0, window_bounds = array<i64: 8, 1>}, {transform_indices = @transform_1, window_bounds = array<i64: 8, 1>}, {transform_indices = @transform_2, window_bounds = array<i64: 8, 256>}, {transform_indices = @transform_3, window_bounds = array<i64: 8, 256>}]} {
    %c0 = arith.constant 0 : index
    %c0_0 = arith.constant 0 : index
    %0 = vector.load %arg4[%c0, %c0_0] : memref<8x256xf32, #tpu.memory_space<vmem>>, vector<8x256xf32>
    %c0_1 = arith.constant 0 : index
    %c0_2 = arith.constant 0 : index
    %1 = vector.load %arg2[%c0_1, %c0_2] : memref<8x1xf32, #tpu.memory_space<vmem>>, vector<8x1xf32>
    %2 = vector.broadcast %1 : vector<8x1xf32> to vector<8x256xf32>
    %3 = arith.mulf %0, %2 : vector<8x256xf32>
    %c0_3 = arith.constant 0 : index
    %c0_4 = arith.constant 0 : index
    %4 = vector.load %arg3[%c0_3, %c0_4] : memref<8x1xf32, #tpu.memory_space<vmem>>, vector<8x1xf32>
    %5 = vector.broadcast %4 : vector<8x1xf32> to vector<8x256xf32>
    %6 = arith.addf %3, %5 : vector<8x256xf32>
    %c0_5 = arith.constant 0 : index
    %c0_6 = arith.constant 0 : index
    %7 = vector.load %arg5[%c0_5, %c0_6] : memref<8x256xf32, #tpu.memory_space<vmem>>, vector<8x256xf32>
    tpu.vector_store %arg5[%c0_5, %c0_6], %6 {strides = array<i32>} : memref<8x256xf32, #tpu.memory_space<vmem>>, vector<8x256xf32>,
    return
  }
  func.func @transform_0(%arg0: i32, %arg1: i32) -> (i32, i32) {
    %c0_i32 = arith.constant 0 : i32
    %c0_i32_0 = arith.constant 0 : i32
    return %arg0, %c0_i32 : i32, i32
  }
  func.func @transform_1(%arg0: i32, %arg1: i32) -> (i32, i32) {
    %c0_i32 = arith.constant 0 : i32
    %c0_i32_0 = arith.constant 0 : i32
    return %arg0, %c0_i32 : i32, i32
  }
  func.func @transform_2(%arg0: i32, %arg1: i32) -> (i32, i32) {
    %c0_i32 = arith.constant 0 : i32
    return %arg0, %arg1 : i32, i32
  }
  func.func @transform_3(%arg0: i32, %arg1: i32) -> (i32, i32) {
    %c0_i32 = arith.constant 0 : i32
    return %arg0, %arg1 : i32, i32
  }
}

</mosaic_0001>

<bundles_post_ra>
// kernel: tpu_custom_call.1
= control target key start
LH: loop header
LB: loop body
LE: loop exit
PB: predicated region body
PF: predicated region fallthrough
CT: control target
= control target key end

     0   :  { %s117_s0 = inlined_call_operand.vmem [shape: f32[8,1], index: 0, kind: input, shape index: {}]   ;;  %s118_s1 = inlined_call_operand.vmem [shape: f32[8,1], index: 1, kind: input, shape index: {}]   ;;  %s119_s2 = inlined_call_operand.vmem [shape: f32[8,256], index: 2, kind: input, shape index: {}]   ;;  %s120_s3 = inlined_call_operand.hbm [shape: f32[8,256], index: 3, kind: output, shape index: {}]  }
   0x1   :  { %v17_v0 = vld [vmem:[%s117_s0] sm:$0xff] }
   0x2   :  { %8 = vsyncpa [#allocation3], 0  ;;  %v80_v1 = vmov 0   ;;  %v25_v2 = vld [vmem:[%s118_s1] sm:$0xff]  ;;  %v16_v5 = vld [vmem:[%s119_s2 + $0x8] sm:$0xff]  ;;  %s81_s0 = smov [#allocation2]  }
   0x3   :  { %53 = vset.pattern.permute.xlu0 %v80_v1  ;;  %v15_v4 = vld [vmem:[%s119_s2] sm:$0xff]  ;;  %s40_s20 = sshll.u32 %s81_s0, 4  ;;  %s42_s23 = sshll.u32 %s120_s3, 4  ;;  %s41_s20 = int_to_ptr.vmem [resolvable:$true] %s40_s20  ;;  %s43_s23 = int_to_ptr.hbm [resolvable:$true] %s42_s23 }
   0x4   :  { %20 = vperm.xlu0 %53, %v17_v0  }
   0xc   :  { %28 = vperm.xlu0 %53, %v25_v2  }
  0x76   :  { %v21_v3 = vpop.permute.xlu0 %20 }
  0x77   :  { %v23_v6 = vmul.f32 %v21_v3, %v15_v4  ;;  %v24_v7 = vmul.f32 %v21_v3, %v16_v5 }
  0x7e   :  { %v29_v8 = vpop.permute.xlu0 %28 }
  0x7f   :  { %v31_v9 = vadd.f32 %v29_v8, %v23_v6  ;;  %v32_v10 = vadd.f32 %v29_v8, %v24_v7 }
  0x81   :  { %33 = vst [vmem:[#allocation2] sm:$0xff] %v31_v9 }
  0x82   :  { %34 = vst [vmem:[#allocation2 + $0x8] sm:$0xff] %v32_v10 }
  0x83   :  { %45 = dma.vmem_to_hbm [thread:$0]  %s41_s20, 256, %s43_s23, [#allocation3]  }
  0x84   :  { %78 = dma.done.wait [#allocation3], 256  }
  0x85   :  { %79 = vsyncadd [#allocation3], 4294967040 }
  0x86   :  { %50 = vsyncpa [#allocation3], 1 }

</bundles_post_ra>
